<compile_context>
chip_gen: v7x
topology: tpu7x:2x2x1
jax: 0.10.0
libtpu: 0.0.40
codegen_flags: <defaults>
</compile_context>

<pallas_src>
import functools

import jax
import jax.numpy as jnp
from jax.experimental import pallas as pl
from jax.experimental.pallas import tpu as pltpu

BN_EPS = 1e-5
GROWTH = 48
BN_SIZE = 4
BLOCK_CONFIG = (6, 12, 36, 24)
NUM_INIT_FEATURES = 96
MXU_DTYPE = jnp.bfloat16


# --------------------------------------------------------------------------
# Small helpers
# --------------------------------------------------------------------------

def _round_up(x, m):
    return (x + m - 1) // m * m


def _pad_rows(m):
    return _round_up(m, 256) if m > 256 else _round_up(m, 8)


def _pad_cols(c):
    return _round_up(c, 128)


def _pad2(x, rp, cp, value=0.0):
    r, c = x.shape
    if r == rp and c == cp:
        return x
    return jnp.pad(x, ((0, rp - r), (0, cp - c)), constant_values=value)


def _mm_tiles(mp, kp, np_):
    tm = 256 if (mp >= 256 and mp % 256 == 0) else mp
    tn = 256 if (np_ >= 256 and np_ % 256 == 0) else 128
    if kp >= 512 and kp % 512 == 0:
        tk = 512
    elif kp % 256 == 0:
        tk = 256
    else:
        tk = 128
    return tm, tn, tk


def _elu(y):
    return jnp.where(y > 0, y, jnp.exp(y) - 1.0)


# --------------------------------------------------------------------------
# Pallas kernels
# --------------------------------------------------------------------------

def _mm_kernel(a_ref, b_ref, o_ref, acc_ref):
    @pl.when(pl.program_id(2) == 0)
    def _():
        acc_ref[...] = jnp.zeros_like(acc_ref)

    acc_ref[...] += jnp.dot(a_ref[...], b_ref[...],
                            preferred_element_type=jnp.float32)

    @pl.when(pl.program_id(2) == pl.num_programs(2) - 1)
    def _():
        o_ref[...] = acc_ref[...]


def _mm_bn_elu_kernel(s_ref, t_ref, a_ref, b_ref, o_ref, acc_ref):
    # out = ELU(a * scale + shift) @ b   (BN+ELU prologue fused into the matmul)
    @pl.when(pl.program_id(2) == 0)
    def _():
        acc_ref[...] = jnp.zeros_like(acc_ref)

    a = _elu(a_ref[...] * s_ref[...] + t_ref[...])          # f32 prologue math
    acc_ref[...] += jnp.dot(a.astype(MXU_DTYPE), b_ref[...],
                            preferred_element_type=jnp.float32)

    @pl.when(pl.program_id(2) == pl.num_programs(2) - 1)
    def _():
        o_ref[...] = acc_ref[...]


def _bn_stats_kernel(x_ref, sum_ref, sq_ref):
    @pl.when(pl.program_id(0) == 0)
    def _():
        sum_ref[...] = jnp.zeros_like(sum_ref)
        sq_ref[...] = jnp.zeros_like(sq_ref)

    x = x_ref[...]
    sum_ref[...] += jnp.sum(x, axis=0, keepdims=True)
    sq_ref[...] += jnp.sum(x * x, axis=0, keepdims=True)


def _bn_act_kernel(s_ref, t_ref, x_ref, o_ref, *, act):
    y = x_ref[...] * s_ref[...] + t_ref[...]
    if act == "elu":
        y = _elu(y)
    elif act == "relu":
        y = jnp.maximum(y, 0.0)
    o_ref[...] = y.astype(o_ref.dtype)


def _window_reduce_kernel(p_ref, o_ref, *, op):
    # p_ref: [tm, taps, Cp]; reduce over the taps axis.
    x = p_ref[...]
    if op == "max":
        o_ref[...] = jnp.max(x, axis=1)
    else:
        o_ref[...] = jnp.sum(x, axis=1) * (1.0 / x.shape[1])


def _bn_relu_gap_kernel(s_ref, t_ref, x_ref, o_ref):
    # Fused head: ReLU(BN(x)) followed by global average pool over HW.
    y = jnp.maximum(x_ref[...] * s_ref[...] + t_ref[...], 0.0)
    o_ref[...] = jnp.sum(y, axis=1) * (1.0 / y.shape[1])


# --------------------------------------------------------------------------
# Jitted pallas_call wrappers (inputs pre-padded so jit caching dedupes shapes)
# --------------------------------------------------------------------------

@jax.jit
def plain_matmul_padded(a, b):
    """a: [Mp, Kp] bf16, b: [Kp, Np] bf16 -> [Mp, Np] f32."""
    mp, kp = a.shape
    _, np_ = b.shape
    tm, tn, tk = _mm_tiles(mp, kp, np_)
    return pl.pallas_call(
        _mm_kernel,
        grid=(mp // tm, np_ // tn, kp // tk),
        in_specs=[pl.BlockSpec((tm, tk), lambda i, j, k: (i, k)),
                  pl.BlockSpec((tk, tn), lambda i, j, k: (k, j))],
        out_specs=pl.BlockSpec((tm, tn), lambda i, j, k: (i, j)),
        out_shape=jax.ShapeDtypeStruct((mp, np_), jnp.float32),
        scratch_shapes=[pltpu.VMEM((tm, tn), jnp.float32)],
        compiler_params=pltpu.CompilerParams(
            dimension_semantics=("parallel", "parallel", "arbitrary")),
    )(a, b)


@jax.jit
def bn_elu_matmul_padded(a, b, scale, shift):
    """ELU(BN(a)) @ b: a [Mp,Kp] f32, b [Kp,Np] bf16, scale/shift [1,Kp] f32."""
    mp, kp = a.shape
    _, np_ = b.shape
    tm, tn, tk = _mm_tiles(mp, kp, np_)
    return pl.pallas_call(
        _mm_bn_elu_kernel,
        grid=(mp // tm, np_ // tn, kp // tk),
        in_specs=[pl.BlockSpec((1, tk), lambda i, j, k: (0, k)),
                  pl.BlockSpec((1, tk), lambda i, j, k: (0, k)),
                  pl.BlockSpec((tm, tk), lambda i, j, k: (i, k)),
                  pl.BlockSpec((tk, tn), lambda i, j, k: (k, j))],
        out_specs=pl.BlockSpec((tm, tn), lambda i, j, k: (i, j)),
        out_shape=jax.ShapeDtypeStruct((mp, np_), jnp.float32),
        scratch_shapes=[pltpu.VMEM((tm, tn), jnp.float32)],
        compiler_params=pltpu.CompilerParams(
            dimension_semantics=("parallel", "parallel", "arbitrary")),
    )(scale, shift, a, b)


@jax.jit
def bn_batch_stats_padded(x):
    """x: [Mp, Cp] f32 (zero padded) -> (sum [1,Cp], sum_sq [1,Cp])."""
    mp, cp = x.shape
    tr = 512 if (mp >= 512 and mp % 512 == 0) else mp
    return pl.pallas_call(
        _bn_stats_kernel,
        grid=(mp // tr,),
        in_specs=[pl.BlockSpec((tr, cp), lambda i: (i, 0))],
        out_specs=[pl.BlockSpec((1, cp), lambda i: (0, 0)),
                   pl.BlockSpec((1, cp), lambda i: (0, 0))],
        out_shape=[jax.ShapeDtypeStruct((1, cp), jnp.float32),
                   jax.ShapeDtypeStruct((1, cp), jnp.float32)],
        compiler_params=pltpu.CompilerParams(
            dimension_semantics=("arbitrary",)),
    )(x)


@functools.partial(jax.jit, static_argnames=("act", "out_dtype"))
def bn_act_padded(x, scale, shift, act, out_dtype=jnp.float32):
    mp, cp = x.shape
    tr = 512 if (mp >= 512 and mp % 512 == 0) else mp
    return pl.pallas_call(
        functools.partial(_bn_act_kernel, act=act),
        grid=(mp // tr,),
        in_specs=[pl.BlockSpec((1, cp), lambda i: (0, 0)),
                  pl.BlockSpec((1, cp), lambda i: (0, 0)),
                  pl.BlockSpec((tr, cp), lambda i: (i, 0))],
        out_specs=pl.BlockSpec((tr, cp), lambda i: (i, 0)),
        out_shape=jax.ShapeDtypeStruct((mp, cp), out_dtype),
        compiler_params=pltpu.CompilerParams(
            dimension_semantics=("parallel",)),
    )(scale, shift, x)


@functools.partial(jax.jit, static_argnames=("op",))
def window_reduce_padded(p, op):
    """p: [Mp, taps, Cp] f32 -> max/avg over taps, tiled over rows."""
    mp, taps, cp = p.shape
    tm = 256 if (mp >= 256 and mp % 256 == 0) else mp
    return pl.pallas_call(
        functools.partial(_window_reduce_kernel, op=op),
        grid=(mp // tm,),
        in_specs=[pl.BlockSpec((tm, taps, cp), lambda i: (i, 0, 0))],
        out_specs=pl.BlockSpec((tm, cp), lambda i: (i, 0)),
        out_shape=jax.ShapeDtypeStruct((mp, cp), jnp.float32),
        compiler_params=pltpu.CompilerParams(
            dimension_semantics=("parallel",)),
    )(p)


@jax.jit
def bn_relu_gap_padded(x3, scale, shift):
    """Fused head: x3 [N, HW, Cp] f32, scale/shift [1,1,Cp] -> [N, Cp]."""
    n, hw, cp = x3.shape
    return pl.pallas_call(
        _bn_relu_gap_kernel,
        grid=(1,),
        in_specs=[pl.BlockSpec((1, 1, cp), lambda i: (0, 0, 0)),
                  pl.BlockSpec((1, 1, cp), lambda i: (0, 0, 0)),
                  pl.BlockSpec((n, hw, cp), lambda i: (0, 0, 0))],
        out_specs=pl.BlockSpec((n, cp), lambda i: (0, 0)),
        out_shape=jax.ShapeDtypeStruct((n, cp), jnp.float32),
        compiler_params=pltpu.CompilerParams(
            dimension_semantics=("arbitrary",)),
    )(scale, shift, x3)


# --------------------------------------------------------------------------
# Plain-JAX glue (im2col, padding, layout plumbing)
# --------------------------------------------------------------------------

def _extract_patches(x, kh, kw, stride, padding, pad_value=0.0):
    """x: [N, H, W, C] -> patches [N, OH, OW, kh*kw, C]."""
    N, H, W, C = x.shape
    xp = jnp.pad(x, ((0, 0), (padding, padding), (padding, padding), (0, 0)),
                 constant_values=pad_value)
    OH = (H + 2 * padding - kh) // stride + 1
    OW = (W + 2 * padding - kw) // stride + 1
    cols = []
    for i in range(kh):
        for j in range(kw):
            sl = jax.lax.slice(
                xp, (0, i, j, 0),
                (N, i + (OH - 1) * stride + 1, j + (OW - 1) * stride + 1, C),
                (1, stride, stride, 1))
            cols.append(sl)
    return jnp.stack(cols, axis=3), OH, OW


def _bn_scale_shift(x2_padded, m_real, c_real, gamma, beta):
    """Training-mode batch stats from a zero-padded [Mp, Cp] view."""
    s, q = bn_batch_stats_padded(x2_padded)
    s = s[0, :c_real]
    q = q[0, :c_real]
    mean = s / m_real
    var = jnp.maximum(q / m_real - mean * mean, 0.0)
    scale = gamma * jax.lax.rsqrt(var + BN_EPS)
    shift = beta - mean * scale
    return scale, shift


def bn_act_nhwc(x, gamma, beta, act, out_dtype=jnp.float32):
    """Standalone BatchNorm (+ELU/ReLU) as a tiled Pallas elementwise pass."""
    N, H, W, C = x.shape
    M = N * H * W
    mp, cp = _pad_rows(M), _pad_cols(C)
    x2 = _pad2(x.reshape(M, C), mp, cp)
    scale, shift = _bn_scale_shift(x2, M, C, gamma, beta)
    y = bn_act_padded(x2, _pad2(scale.reshape(1, C), 1, cp),
                      _pad2(shift.reshape(1, C), 1, cp), act=act,
                      out_dtype=out_dtype)
    return y[:M, :C].reshape(N, H, W, C)


def conv_bn_elu_1x1(x, w_entry, gamma, beta):
    """Fused ELU(BN(x)) @ W for a 1x1 / stride-1 conv (pre-activation)."""
    N, H, W, C = x.shape
    M = N * H * W
    mp, kp = _pad_rows(M), w_entry["kp"]
    x2 = _pad2(x.reshape(M, C), mp, kp)
    scale, shift = _bn_scale_shift(x2, M, C, gamma, beta)
    out = bn_elu_matmul_padded(x2, w_entry["w"],
                               _pad2(scale.reshape(1, C), 1, kp),
                               _pad2(shift.reshape(1, C), 1, kp))
    return out[:M, :w_entry["n"]].reshape(N, H, W, w_entry["n"])


def conv_matmul(a, w_entry):
    """Plain conv matmul on pre-activated / im2col'd rows.  a: [M, K]."""
    M, _ = a.shape
    mp, kp = _pad_rows(M), w_entry["kp"]
    a_p = _pad2(a.astype(MXU_DTYPE), mp, kp)
    out = plain_matmul_padded(a_p, w_entry["w"])
    return out[:M, :w_entry["n"]]


def pool2d(x, kh, kw, stride, padding, op):
    pad_val = -1e30 if op == "max" else 0.0
    patches, OH, OW = _extract_patches(x, kh, kw, stride, padding, pad_val)
    N, C = x.shape[0], x.shape[-1]
    M = N * OH * OW
    mp, cp = _pad_rows(M), _pad_cols(C)
    # [M, taps, C] layout: no host-side transpose copy; kernel reduces axis 1.
    p = patches.reshape(M, kh * kw, C)
    p = jnp.pad(p, ((0, mp - M), (0, 0), (0, cp - C)), constant_values=pad_val)
    out = window_reduce_padded(p, op=op)
    return out[:M, :C].reshape(N, OH, OW, C)


# --------------------------------------------------------------------------
# Deterministic parameter init (DenseNet-161, classifier -> Linear(2208, 1))
# --------------------------------------------------------------------------

def _bn_params(c):
    return (jnp.ones((c,), jnp.float32), jnp.zeros((c,), jnp.float32))


def _kaiming_conv(key, cout, cin, kh, kw):
    fan_in = cin * kh * kw
    std = (2.0 / fan_in) ** 0.5
    return std * jax.random.normal(key, (cout, cin, kh, kw), jnp.float32)


def _pack_conv(w):
    """torch [Cout, Cin, KH, KW] -> padded bf16 [Kp, Np] matmul operand."""
    cout, cin, kh, kw = w.shape
    k = kh * kw * cin
    mat = jnp.transpose(w, (2, 3, 1, 0)).reshape(k, cout)
    kp = _round_up(k, 512) if k > 512 else _round_up(k, 128)
    np_ = _round_up(cout, 128)
    mat = jnp.pad(mat, ((0, kp - k), (0, np_ - cout))).astype(MXU_DTYPE)
    return {"w": mat, "kp": kp, "n": cout}


def init_densenet161_params(key):
    keys = iter(jax.random.split(key, 200))
    p = {"conv0": _pack_conv(_kaiming_conv(next(keys), NUM_INIT_FEATURES, 3, 7, 7)),
         "bn0": _bn_params(NUM_INIT_FEATURES)}
    feats = NUM_INIT_FEATURES
    inter = BN_SIZE * GROWTH                      # 192 bottleneck channels
    blocks, transitions = [], []
    for bi, n_layers in enumerate(BLOCK_CONFIG):
        layers = []
        for li in range(n_layers):
            cin = feats + li * GROWTH
            layers.append({
                "bn1": _bn_params(cin),
                "conv1": _pack_conv(_kaiming_conv(next(keys), inter, cin, 1, 1)),
                "bn2": _bn_params(inter),
                "conv2": _pack_conv(_kaiming_conv(next(keys), GROWTH, inter, 3, 3)),
            })
        blocks.append(layers)
        feats += n_layers * GROWTH
        if bi < len(BLOCK_CONFIG) - 1:
            transitions.append({
                "bn": _bn_params(feats),
                "conv": _pack_conv(_kaiming_conv(next(keys), feats // 2, feats, 1, 1)),
            })
            feats //= 2
    p["blocks"] = blocks
    p["transitions"] = transitions
    p["bn5"] = _bn_params(feats)
    assert feats == 2208, feats
    k1, k2 = jax.random.split(next(keys))
    bound = 1.0 / (feats ** 0.5)
    fc_w = jax.random.uniform(k1, (1, feats, 1, 1), jnp.float32, -bound, bound)
    p["fc"] = _pack_conv(fc_w)                    # [2208 -> 2304, 1 -> 128] bf16
    p["fc_b"] = jax.random.uniform(k2, (1,), jnp.float32, -bound, bound)
    return p


# --------------------------------------------------------------------------
# Forward pass
# --------------------------------------------------------------------------

def dense_layer_forward(x, layer):
    # BN1 -> ELU -> conv1x1   (BN+ELU fused as the matmul prologue)
    b = conv_bn_elu_1x1(x, layer["conv1"], *layer["bn1"])
    # BN2 -> ELU, stored in bf16 so im2col + the 3x3 matmul stay bf16.
    # (Separate pass so the 3x3 conv's spatial zero-padding is exact.)
    b = bn_act_nhwc(b, *layer["bn2"], act="elu", out_dtype=MXU_DTYPE)
    # conv 3x3 / stride 1 / pad 1 (im2col + tiled MXU matmul, bf16 operands)
    N, H, W, C = b.shape
    patches, OH, OW = _extract_patches(b, 3, 3, 1, 1, 0.0)
    a = patches.reshape(N * OH * OW, 9 * C)
    new = conv_matmul(a, layer["conv2"])
    return new.reshape(N, OH, OW, GROWTH)


def transition_forward(x, trans):
    y = conv_bn_elu_1x1(x, trans["conv"], *trans["bn"])     # BN+ELU+1x1 fused
    return pool2d(y, 2, 2, 2, 0, "avg")                     # AvgPool2d(2, 2)


def stem_forward(x, params):
    # conv0: 7x7 / stride 2 / pad 3 (bias-free)
    N = x.shape[0]
    patches, OH, OW = _extract_patches(x, 7, 7, 2, 3, 0.0)
    a = patches.reshape(N * OH * OW, -1)
    y = conv_matmul(a, params["conv0"]).reshape(N, OH, OW, NUM_INIT_FEATURES)
    # norm0 + ELU, then maxpool 3x3 / stride 2 / pad 1
    y = bn_act_nhwc(y, *params["bn0"], act="elu")
    return pool2d(y, 3, 3, 2, 1, "max")


def head_forward(x, params):
    # norm5 -> functional F.relu (not a module => stays ReLU) -> GAP -> fc
    # BN+ReLU+GAP fused into a single Pallas kernel.
    N, H, W, C = x.shape
    M = N * H * W
    mp, cp = _pad_rows(M), _pad_cols(C)
    x2 = _pad2(x.reshape(M, C), mp, cp)
    scale, shift = _bn_scale_shift(x2, M, C, *params["bn5"])
    x3 = x2[:M].reshape(N, H * W, cp)
    pooled = bn_relu_gap_padded(
        x3,
        _pad2(scale.reshape(1, C), 1, cp).reshape(1, 1, cp),
        _pad2(shift.reshape(1, C), 1, cp).reshape(1, 1, cp))[:, :C]
    logits = conv_matmul(pooled, params["fc"])               # [N, 1]
    return logits + params["fc_b"][None, :]


def sempro_densenet_forward(params, x_nchw):
    # layout: input NCHW (PyTorch); internal NHWC.
    x = jnp.transpose(x_nchw, (0, 2, 3, 1)).astype(jnp.float32)
    x = stem_forward(x, params)
    for bi in range(len(BLOCK_CONFIG)):
        for layer in params["blocks"][bi]:
            new = dense_layer_forward(x, layer)
            x = jnp.concatenate([x, new], axis=-1)           # DenseNet concat
        if bi < len(BLOCK_CONFIG) - 1:
            x = transition_forward(x, params["transitions"][bi])
    return head_forward(x, params)


if __name__ == "__main__":
    key = jax.random.PRNGKey(0)
    pk, xk = jax.random.split(key)
    params = init_densenet161_params(pk)
    # Small input consistent with the module: NCHW, 3 channels, 64x64 spatial.
    x = jax.random.normal(xk, (2, 3, 64, 64), jnp.float32)
    out = sempro_densenet_forward(params, x)
    out = jax.block_until_ready(out)
    assert out.shape == (2, 1), out.shape
    print("KERNEL_OK")
</pallas_src>

<mosaic_0001>
module attributes {stable_mosaic.version = 11 : i64} {
  func.func @_mm_kernel(%arg0: i32, %arg1: i32, %arg2: i32, %arg3: memref<256x256xbf16, #tpu.memory_space<vmem>>, %arg4: memref<256x128xbf16, #tpu.memory_space<vmem>>, %arg5: memref<256x128xf32, #tpu.memory_space<vmem>>, %arg6: memref<256x128xf32, #tpu.memory_space<vmem>>) attributes {dimension_semantics = [#tpu.dimension_semantics<parallel>, #tpu.dimension_semantics<parallel>, #tpu.dimension_semantics<arbitrary>], iteration_bounds = array<i64: 8, 1, 1>, scalar_prefetch = 0 : i64, scratch_operands = 1 : i64, tpu.core_type = #tpu.core_type<tc>, window_params = [{transform_indices = @transform_0, window_bounds = array<i64: 256, 256>}, {transform_indices = @transform_1, window_bounds = array<i64: 256, 128>}, {transform_indices = @transform_2, window_bounds = array<i64: 256, 128>}]} {
    %c0_i32 = arith.constant 0 : i32
    %0 = arith.cmpi eq, %arg2, %c0_i32 : i32
    %1 = arith.extui %0 : i1 to i32
    %c0_i32_0 = arith.constant 0 : i32
    %2 = arith.cmpi ne, %1, %c0_i32_0 : i32
    scf.if %2 {
      %cst_10 = arith.constant 0.000000e+00 : f32
      %12 = vector.broadcast %cst_10 : f32 to vector<256x128xf32>
      %c0_11 = arith.constant 0 : index
      %c0_12 = arith.constant 0 : index
      %13 = vector.load %arg6[%c0_11, %c0_12] : memref<256x128xf32, #tpu.memory_space<vmem>>, vector<256x128xf32>
      tpu.vector_store %arg6[%c0_11, %c0_12], %12 {strides = array<i32>} : memref<256x128xf32, #tpu.memory_space<vmem>>, vector<256x128xf32>,
    } else {
    }
    %c0 = arith.constant 0 : index
    %c0_1 = arith.constant 0 : index
    %3 = vector.load %arg6[%c0, %c0_1] : memref<256x128xf32, #tpu.memory_space<vmem>>, vector<256x128xf32>
    %c0_2 = arith.constant 0 : index
    %c0_3 = arith.constant 0 : index
    %4 = vector.load %arg3[%c0_2, %c0_3] : memref<256x256xbf16, #tpu.memory_space<vmem>>, vector<256x256xbf16>
    %c0_4 = arith.constant 0 : index
    %c0_5 = arith.constant 0 : index
    %5 = vector.load %arg4[%c0_4, %c0_5] : memref<256x128xbf16, #tpu.memory_space<vmem>>, vector<256x128xbf16>
    %cst = arith.constant dense<0.000000e+00> : vector<256x128xf32>
    %6 = tpu.matmul %4, %5, %cst {dimension_numbers = #tpu.dot_dimension_numbers<[1], [0], [0], [1], [0, 0, 1, 1], [], []>} : vector<256x256xbf16>, vector<256x128xbf16>, vector<256x128xf32> -> vector<256x128xf32>
    %7 = arith.addf %3, %6 : vector<256x128xf32>
    %c0_6 = arith.constant 0 : index
    %c0_7 = arith.constant 0 : index
    %8 = vector.load %arg6[%c0_6, %c0_7] : memref<256x128xf32, #tpu.memory_space<vmem>>, vector<256x128xf32>
    tpu.vector_store %arg6[%c0_6, %c0_7], %7 {strides = array<i32>} : memref<256x128xf32, #tpu.memory_space<vmem>>, vector<256x128xf32>,
    %c0_i32_8 = arith.constant 0 : i32
    %9 = arith.cmpi eq, %arg2, %c0_i32_8 : i32
    %10 = arith.extui %9 : i1 to i32
    %c0_i32_9 = arith.constant 0 : i32
    %11 = arith.cmpi ne, %10, %c0_i32_9 : i32
    scf.if %11 {
      %c0_10 = arith.constant 0 : index
      %c0_11 = arith.constant 0 : index
      %12 = vector.load %arg6[%c0_10, %c0_11] : memref<256x128xf32, #tpu.memory_space<vmem>>, vector<256x128xf32>
      %c0_12 = arith.constant 0 : index
      %c0_13 = arith.constant 0 : index
      %13 = vector.load %arg5[%c0_12, %c0_13] : memref<256x128xf32, #tpu.memory_space<vmem>>, vector<256x128xf32>
      tpu.vector_store %arg5[%c0_12, %c0_13], %12 {strides = array<i32>} : memref<256x128xf32, #tpu.memory_space<vmem>>, vector<256x128xf32>,
    } else {
    }
    return
  }
  func.func @transform_0(%arg0: i32, %arg1: i32, %arg2: i32) -> (i32, i32) {
    %c0_i32 = arith.constant 0 : i32
    return %arg0, %arg2 : i32, i32
  }
  func.func @transform_1(%arg0: i32, %arg1: i32, %arg2: i32) -> (i32, i32) {
    %c0_i32 = arith.constant 0 : i32
    return %arg2, %arg1 : i32, i32
  }
  func.func @transform_2(%arg0: i32, %arg1: i32, %arg2: i32) -> (i32, i32) {
    %c0_i32 = arith.constant 0 : i32
    return %arg0, %arg1 : i32, i32
  }
}

</mosaic_0001>

<bundles_post_ra>
// kernel: plain_matmul_padded.1
= control target key start
LH: loop header
LB: loop body
LE: loop exit
PB: predicated region body
PF: predicated region fallthrough
CT: control target
= control target key end

     0   :  { %7 = vsyncpa [#allocation4], 0  ;;  %s1817_s0 = inlined_call_operand.hbm [shape: bf16[2048,256], index: 0, kind: input, shape index: {}]   ;;  %s1818_s1 = inlined_call_operand.hbm [shape: bf16[256,128], index: 1, kind: input, shape index: {}]   ;;  %s1819_s2 = inlined_call_operand.hbm [shape: f32[2048,128], index: 2, kind: output, shape index: {}]  }
   0x1   :  { %9 = vsyncpa [#allocation4 + $0x1], 0 }
   0x2   :  { %10 = vsyncpa [#allocation7], 0 }
   0x3   :  { %11 = vsyncpa [#allocation5], 0 }
   0x4   :  { %13 = vsyncpa [#allocation5 + $0x1], 0  ;;  %s1527_s9 = smov 0   ;;  %s1529_s10 = smov 0  }
   0x5   :  { %s1531_s11 = smov 0   ;;  %s1533_s12 = smov 0  }
   0x6   :  { %s1535_s13 = smov 0   ;;  %s1537_s14 = smov 0  }
   0x7 LB: > { %s1017_s15 = sadd.s32 4294967295, %s1501_s14   ;;  %s1018_s16 = sadd.s32 4294967294, %s1501_s14   ;;  %s1501_s14 = sphi %s1537_s14, %s19_s14   ;;  %s1497_s13 = sphi %s1535_s13, %s1842_s13   ;;  %s1493_s12 = sphi %s1533_s12, %s1841_s12   ;;  %s1489_s11 = sphi %s1531_s11, %s1840_s11   ;;  %s1485_s10 = sphi %s1529_s10, %s1839_s10   ;;  %s1481_s9 = sphi %s1527_s9, %s1838_s9  }
   0x8   : > { %p60_p0 = scmp.ne.s32.totalorder %s1485_s10, %s1481_s9  ;;  %p1561_p1 = scmp.eq.s32.totalorder %s1017_s15, 0 }
   0x9   : > { %p1565_p2 = scmp.eq.s32.totalorder %s1017_s15, 7  ;;  %p120_p3 = scmp.eq.s32.totalorder %s1018_s16, 7 }
   0xa   : > { %s1824_s17 = scalar_select %p1561_p1, 1, 0 }
   0xb   : > { %s1825_s18 = scalar_select %p1565_p2, 1, 0 }
   0xc   : > { %p1571_p4 = por %p1561_p1, %p60_p0  ;;  %p1019_p5 = scmp.ge.s32.totalorder %s1501_s14, 1 }
   0xd   : > { %p1576_p6 = por %p120_p3, %p60_p0  ;;  %p127_p7 = scmp.lt.s32.totalorder %s1501_s14, 9 }
   0xe   : > { %s1826_s19 = scalar_select %p1571_p4, 1, 0 }
   0xf   : > { %s1827_s20 = scalar_select %p1576_p6, 1, 0 }
  0x10   : > { %p1581_p8 = pnand %p1019_p5, %p127_p7  ;;  %s1503_s22 = smov [#allocation6]  }
  0x11   : > { %s143_s23 = sshll.u32 %s1503_s22, 4  ;;  %s38_s25 = sadd.s32 1, %s1497_s13  ;;  %s144_s23 = int_to_ptr.vmem [resolvable:$true] %s143_s23 }
  0x12   : > { %s1828_s21 = scalar_select %p1581_p8, 1, 0 }
  0x13   : > { %p1222_p9 = pneg %p1581_p8  ;;  %s1357_s28 = scalar_lea.hbm %s1818_s1, 2048 }
  0x14   : > { %p1358_p11 = scmp.ne.s32.totalorder %s1818_s1, %s1357_s28  ;;  %p1364_p3 = scmp.lt.u32.totalorder %s1357_s28, %s1818_s1 }
  0x15   : > { %p1589_p10 = pnand %p1222_p9, %p1561_p1 }
  0x17   : > { %p1359_p12 = pneg %p1589_p10 }
  0x19   : > { %p1360_p13 = pnand %p1359_p12, %p1358_p11 }
  0x1b   : > { %p1361_p0 = pneg %p1360_p13 }
  0x1d   : > { %p1366_p5 = pnand %p1364_p3, %p1361_p0 }
  0x1f   : > { %1369 = shalt.err (!%p1366_p5)
}
  0x20   : > { %s1370_s5 = scalar_lea.vmem %s144_s23, 2048  ;;  %p1378_p1 = scmp.lt.s32.totalorder %s144_s23, %s144_s23 }
  0x21   : > { %p1371_p7 = scmp.ne.s32.totalorder %s144_s23, %s1370_s5  ;;  %p1379_p4 = scmp.lt.s32.totalorder %s1370_s5, %s1370_s5 }
  0x23   : > { %p1373_p9 = pnand %p1371_p7, %p1359_p12  ;;  %p1380_p8 = por %p1379_p4, %p1378_p1 }
  0x25   : > { %p1374_p6 = pneg %p1373_p9 }
  0x27   : > { %p1381_p2 = pnand %p1380_p8, %p1374_p6 }
  0x29   : > { %1384 = shalt.err (!%p1381_p2)
}
  0x2a   : > { %s1504_s6 = smov 64   ;;  %s1505_s7 = smov 4  }
  0x2b   : > { %1225 = dma.hbm_to_vmem [thread:$0]  (!%p1589_p10), %s1818_s1, 2048, %s144_s23, [#allocation7], %s1504_s6, %s1504_s6, %s1505_s7  }
  0x2c   : > { %p40_p1 = scmp.ge.s32.totalorder %s38_s25, 8  ;;  %s47_s16 = sadd.s32 1, %s1489_s11 }
  0x2d   : > { %p54_p2 = scmp.ne.s32.totalorder %s1489_s11, %s1485_s10  ;;  %p55_p4 = scmp.eq.s32.totalorder %s1501_s14, 0 }
  0x2e   : > { %s1844_s25 = smov (%p40_p1, %s38_s25), 0  ;;  %p1831_p8 = scmp.ne.s32.totalorder %s1825_s18, 0 }
  0x2f   : > { %p1616_p6 = por %p55_p4, %p54_p2  ;;  %s42_s24 = ssub.s32 %s1497_s13, %s1844_s25 }
  0x30   : > { %p1622_p11 = por %p1831_p8, %p54_p2  ;;  %p1235_p12 = scmp.lt.s32.totalorder %s1501_s14, 8 }
  0x31   : > { %p45_p10 = scmp.eq.s32.totalorder %s42_s24, 0  ;;  %s157_s23 = sand.u32 1, %s1489_s11  }
  0x32   : > { %s1022_s27 = sshll.u32 %s157_s23, 8  ;;  %s1084_s29 = sshll.u32 %s1497_s13, 12 }
  0x33   : > { %s1631_s28 = scalar_select %p45_p10, %s1489_s11, %s47_s16  }
  0x34   : > { %s1637_s4 = scalar_lea.hbm %s1817_s0, %s1084_s29  ;;  %s161_s18 = scalar_lea.vmem [#allocation3], %s1022_s27 }
  0x35   : > { %s171_s5 = sshll.u32 %s161_s18, 4  ;;  %p1643_p13 = pnand %p1235_p12, %p1616_p6  ;;  %s1639_s5 = int_to_ptr.vmem [resolvable:$true] %s171_s5 }
  0x36   : > { %s1647_s7 = scalar_lea.sflag [#allocation4], %s157_s23  ;;  %s1385_s8 = scalar_lea.hbm %s1637_s4, 4096 }
  0x37   : > { %p1386_p0 = scmp.ne.s32.totalorder %s1637_s4, %s1385_s8  ;;  %p1387_p3 = pneg %p1643_p13 }
  0x38   : > { %s1390_s22 = scalar_lea.hbm %s1817_s0, 32768  ;;  %p1391_p9 = scmp.lt.u32.totalorder %s1637_s4, %s1817_s0 }
  0x39   : > { %p1388_p5 = pnand %p1387_p3, %p1386_p0  ;;  %p1392_p1 = scmp.lt.u32.totalorder %s1390_s22, %s1385_s8 }
  0x3a   : > { %p1394_p4 = scmp.lt.u32.totalorder %s1385_s8, %s1637_s4 }
  0x3b   : > { %p1389_p7 = pneg %p1388_p5  ;;  %p1393_p2 = por %p1392_p1, %p1391_p9 }
  0x3d   : > { %p1395_p6 = por %p1394_p4, %p1393_p2 }
  0x3f   : > { %p1396_p8 = pnand %p1395_p6, %p1389_p7 }
  0x41   : > { %1399 = shalt.err (!%p1396_p8)
}
  0x42   : > { %s1400_s23 = scalar_lea.vmem %s1639_s5, 4096  ;;  %s1506_s29 = smov [#allocation3]  }
  0x43   : > { %p1401_p12 = scmp.ne.s32.totalorder %s1639_s5, %s1400_s23  ;;  %s1405_s30 = sshll.u32 %s1506_s29, 4  ;;  %s1406_s30 = int_to_ptr.vmem [resolvable:$false] %s1405_s30 }
  0x44   : > { %s1407_s3 = scalar_lea.vmem %s1406_s30, 8192  ;;  %p1408_p5 = scmp.lt.s32.totalorder %s1639_s5, %s1406_s30 }
  0x45   : > { %p1403_p10 = pnand %p1401_p12, %p1387_p3  ;;  %p1409_p9 = scmp.lt.s32.totalorder %s1407_s3, %s1400_s23 }
  0x47   : > { %p1404_p0 = pneg %p1403_p10  ;;  %p1410_p1 = por %p1409_p9, %p1408_p5 }
  0x49   : > { %p1411_p2 = pnand %p1410_p1, %p1404_p0 }
  0x4b   : > { %1414 = shalt.err (!%p1411_p2)
}
  0x4c   : > { %s1507_s18 = smov 128   ;;  %s1508_s8 = smov 8  }
  0x4d   : > { %1229 = dma.hbm_to_vmem [thread:$0]  (!%p1643_p13), %s1637_s4, 4096, %s1639_s5, %s1647_s7, %s1507_s18, %s1507_s18, %s1508_s8  }
  0x4e   : > { %p1834_p3 = scmp.ne.s32.totalorder %s1828_s21, 0 }
  0x4f   : > { %s1678_s15 = sand.u32 (!%p1834_p3), 1, %s1485_s10   ;;  %p1835_p7 = scmp.ne.s32.totalorder (!%p1834_p3), %s1826_s19, 0 }
  0x50   : > { %183 = sbr.rel (%p1834_p3) target bundleno = 412 (0x19c), region = 28  ;;  %s1027_s16 = sshll.u32 (!%p1834_p3), %s1678_s15, 8 }
  0x51   : > { %s186_s22 = scalar_lea.sflag (!%p1834_p3), [#allocation4], %s1678_s15  ;;  %s1684_s24 = scalar_lea.vmem (!%p1834_p3), [#allocation3], %s1027_s16 }
  0x57   : > { %1468 = dma.done.wait (%p1835_p7), %s186_s22, 4096  }
  0x58   : > { %1470 = vsyncadd (%p1835_p7), %s186_s22, 4294963200  ;;  %p1836_p13 = scmp.ne.s32.totalorder %s1824_s17, 0 }
  0x5a   : > { %1472 = dma.done.wait (%p1836_p13), [#allocation7], 2048  }
  0x5b   : > { %1474 = vsyncadd (%p1836_p13), [#allocation7], 4294965248  ;;  %v1293_v0 = vld [vmem:[#allocation6 + $0x40] sm:$0xff]   ;;  %v1295_v2 = vld [vmem:[#allocation6 + $0x48] sm:$0xff]   ;;  %s1728_s17 = scalar_lea.vmem [#allocation8], %s1027_s16  ;;  %s1085_s19 = sshll.u32 %s1493_s12, 12 }
  0x5c   : > { %v1294_v1 = vld [vmem:[#allocation6] sm:$0xff]   ;;  %1086 = vmatprep.subr.bf16.mxu0 %v1293_v0  ;;  %1198 = vmatprep.subr.bf16.mxu1 %v1293_v0  ;;  %v1296_v3 = vld [vmem:[#allocation6 + $0x8] sm:$0xff]   ;;  %v1297_v4 = vld [vmem:[#allocation6 + $0x50] sm:$0xff]   ;;  %s914_s21 = sshll.u32 %s1728_s17, 4  ;;  %s1763_s6 = scalar_lea.hbm %s1819_s2, %s1085_s19  ;;  %s1765_s21 = int_to_ptr.vmem [resolvable:$true] %s914_s21 }
  0x5d   : > { %1087 = vmatpush3.bf16.msra.mxu0 %v1294_v1  ;;  %1206 = vmatpush3.bf16.msra.mxu1 %v1294_v1  ;;  %v1298_v5 = vld [vmem:[#allocation6 + $0x10] sm:$0xff]   ;;  %v1299_v6 = vld [vmem:[#allocation6 + $0x58] sm:$0xff]   ;;  %v1301_v8 = vld [vmem:[#allocation6 + $0x60] sm:$0xff]   ;;  %s900_s12 = scalar_lea.sflag [#allocation5], %s1678_s15  ;;  %s1415_s7 = scalar_lea.vmem %s1765_s21, 4096 }
  0x5e   : > { %1088 = vmatprep.subr.bf16.mxu0 %v1295_v2  ;;  %1199 = vmatprep.subr.bf16.mxu1 %v1295_v2  ;;  %v1300_v7 = vld [vmem:[#allocation6 + $0x18] sm:$0xff]   ;;  %v1302_v9 = vld [vmem:[#allocation6 + $0x20] sm:$0xff]   ;;  %v1303_v10 = vld [vmem:[#allocation6 + $0x68] sm:$0xff]   ;;  %p1416_p4 = scmp.ne.s32.totalorder %s1765_s21, %s1415_s7  ;;  %s1509_s27 = smov [#allocation8]  }
  0x5f   : > { %v1311_v11 = vld [vmem:[%s1684_s24 + $0x4] ss:$8 sps:$4 sm:$0xff]   ;;  %v1305_v14 = vld [vmem:[#allocation6 + $0x70] sm:$0xff]   ;;  %v1307_v16 = vld [vmem:[#allocation6 + $0x78] sm:$0xff]   ;;  %s1419_s23 = sshll.u32 %s1509_s27, 4  ;;  %s1420_s23 = int_to_ptr.vmem [resolvable:$false] %s1419_s23 }
  0x60   : > { %v1314_v12 = vld [vmem:[%s1684_s24 + $0x84] ss:$8 sps:$4 sm:$0xff]   ;;  %639 = vmatprep.mubr.bf16.mxu0 %v1311_v11  ;;  %v1306_v15 = vld [vmem:[#allocation6 + $0x30] sm:$0xff]   ;;  %v1308_v17 = vld [vmem:[#allocation6 + $0x38] sm:$0xff]   ;;  %p1417_p6 = pnand %p1416_p4, %p1622_p11  ;;  %s1421_s29 = scalar_lea.vmem %s1420_s23, 8192 }
  0x61   : > { %1089 = vmatpush3.bf16.msra.mxu0 %v1296_v3  ;;  %1207 = vmatpush3.bf16.msra.mxu1 %v1296_v3  ;;  %v1304_v13 = vld [vmem:[#allocation6 + $0x28] sm:$0xff]   ;;  %v1315_v20 = vld [vmem:[%s1684_s24 + $0x14] ss:$8 sps:$4 sm:$0xff]   ;;  %v1319_v22 = vld [vmem:[%s1684_s24 + $0x10] ss:$8 sps:$4 sm:$0xff]   ;;  %p1422_p12 = scmp.lt.s32.totalorder %s1765_s21, %s1420_s23  ;;  %p1423_p10 = scmp.lt.s32.totalorder %s1421_s29, %s1415_s7 }
  0x62   : > { %1090 = vmatprep.subr.bf16.mxu0 %v1297_v4  ;;  %1200 = vmatprep.subr.bf16.mxu1 %v1297_v4  ;;  %v1309_v18 = vld [vmem:[%s1684_s24] ss:$8 sps:$4 sm:$0xff]   ;;  %v1317_v21 = vld [vmem:[%s1684_s24 + $0x94] ss:$8 sps:$4 sm:$0xff]   ;;  %v1320_v23 = vld [vmem:[%s1684_s24 + $0x90] ss:$8 sps:$4 sm:$0xff]   ;;  %p1418_p8 = pneg %p1417_p6 }
  0x63   : > { %703 = vmatprep.mubr.bf16.mxu1 %v1314_v12  ;;  %v1312_v19 = vld [vmem:[%s1684_s24 + $0x80] ss:$8 sps:$4 sm:$0xff]   ;;  %v1321_v24 = vld [vmem:[%s1684_s24 + $0x24] ss:$8 sps:$4 sm:$0xff]   ;;  %v1327_v28 = vld [vmem:[%s1684_s24 + $0x34] ss:$8 sps:$4 sm:$0xff]   ;;  %p1424_p0 = por %p1423_p10, %p1422_p12 }
  0x64   : > { %v1323_v25 = vld [vmem:[%s1684_s24 + $0xa4] ss:$8 sps:$4 sm:$0xff]   ;;  %v1325_v26 = vld [vmem:[%s1684_s24 + $0x20] ss:$8 sps:$4 sm:$0xff]   ;;  %v1329_v29 = vld [vmem:[%s1684_s24 + $0xb4] ss:$8 sps:$4 sm:$0xff]  }
  0x65   : > { %1091 = vmatpush3.bf16.msra.mxu0 %v1298_v5  ;;  %1208 = vmatpush3.bf16.msra.mxu1 %v1298_v5  ;;  %v1326_v27 = vld [vmem:[%s1684_s24 + $0xa0] ss:$8 sps:$4 sm:$0xff]   ;;  %v1331_v30 = vld [vmem:[%s1684_s24 + $0x30] ss:$8 sps:$4 sm:$0xff]   ;;  %v1333_v32 = vld [vmem:[%s1684_s24 + $0x44] ss:$8 sps:$4 sm:$0xff]   ;;  %p1425_p5 = pnand %p1424_p0, %p1418_p8 }
  0x66   : > { %1092 = vmatprep.subr.bf16.mxu0 %v1299_v6  ;;  %1201 = vmatprep.subr.bf16.mxu1 %v1299_v6  ;;  %v1332_v31 = vld [vmem:[%s1684_s24 + $0xb0] ss:$8 sps:$4 sm:$0xff]   ;;  %v1335_v33 = vld [vmem:[%s1684_s24 + $0xc4] ss:$8 sps:$4 sm:$0xff]   ;;  %v1337_v34 = vld [vmem:[%s1684_s24 + $0x40] ss:$8 sps:$4 sm:$0xff]  }
  0x67   : > { %v1338_v35 = vld [vmem:[%s1684_s24 + $0xc0] ss:$8 sps:$4 sm:$0xff]   ;;  %v1339_v36 = vld [vmem:[%s1684_s24 + $0x54] ss:$8 sps:$4 sm:$0xff]   ;;  %v1343_v38 = vld [vmem:[%s1684_s24 + $0x50] ss:$8 sps:$4 sm:$0xff]  }
  0x68   : > { %v1341_v37 = vld [vmem:[%s1684_s24 + $0xd4] ss:$8 sps:$4 sm:$0xff]   ;;  %v1344_v39 = vld [vmem:[%s1684_s24 + $0xd0] ss:$8 sps:$4 sm:$0xff]   ;;  %v1345_v40 = vld [vmem:[%s1684_s24 + $0x64] ss:$8 sps:$4 sm:$0xff]  }
  0x69   : > { %1093 = vmatpush3.bf16.msra.mxu0 %v1300_v7  ;;  %1209 = vmatpush3.bf16.msra.mxu1 %v1300_v7  ;;  %v1347_v41 = vld [vmem:[%s1684_s24 + $0xe4] ss:$8 sps:$4 sm:$0xff]   ;;  %v1349_v42 = vld [vmem:[%s1684_s24 + $0x60] ss:$8 sps:$4 sm:$0xff]   ;;  %v1351_v44 = vld [vmem:[%s1684_s24 + $0x74] ss:$8 sps:$4 sm:$0xff]  }
  0x6a   : > { %1094 = vmatprep.subr.bf16.mxu0 %v1301_v8  ;;  %1202 = vmatprep.subr.bf16.mxu1 %v1301_v8  ;;  %v1350_v43 = vld [vmem:[%s1684_s24 + $0xe0] ss:$8 sps:$4 sm:$0xff]   ;;  %v1353_v45 = vld [vmem:[%s1684_s24 + $0xf4] ss:$8 sps:$4 sm:$0xff]   ;;  %v1355_v46 = vld [vmem:[%s1684_s24 + $0x70] ss:$8 sps:$4 sm:$0xff]  }
  0x6b   : > { %v1356_v47 = vld [vmem:[%s1684_s24 + $0xf0] ss:$8 sps:$4 sm:$0xff]  }
  0x6d   : > { %1095 = vmatpush3.bf16.msra.mxu0 %v1302_v9  ;;  %1210 = vmatpush3.bf16.msra.mxu1 %v1302_v9 }
  0x6e   : > { %1096 = vmatprep.subr.bf16.mxu0 %v1303_v10  ;;  %1203 = vmatprep.subr.bf16.mxu1 %v1303_v10 }
  0x71   : > { %1097 = vmatpush3.bf16.msra.mxu0 %v1304_v13  ;;  %1211 = vmatpush3.bf16.msra.mxu1 %v1304_v13 }
  0x72   : > { %1098 = vmatprep.subr.bf16.mxu0 %v1305_v14  ;;  %1204 = vmatprep.subr.bf16.mxu1 %v1305_v14 }
  0x75   : > { %1099 = vmatpush3.bf16.msra.mxu0 %v1306_v15  ;;  %1212 = vmatpush3.bf16.msra.mxu1 %v1306_v15 }
  0x76   : > { %1100 = vmatprep.subr.bf16.mxu0 %v1307_v16  ;;  %1205 = vmatprep.subr.bf16.mxu1 %v1307_v16 }
  0x79   : > { %1101 = vmatpush3.bf16.msra.mxu0 %v1308_v17  ;;  %1213 = vmatpush3.bf16.msra.mxu1 %v1308_v17 }
  0x7c   : > { %640 = vmatmul.mubr.bf16.vlgmr.msra.gmra.mrb[0].mxu0 %v1309_v18  ;;  %704 = vmatmul.mubr.bf16.vlgmr.msra.gmra.mrb[0].mxu1 %v1312_v19 }
  0x7d   : > { %647 = vmatprep.mubr.bf16.mxu0 %v1315_v20  ;;  %711 = vmatprep.mubr.bf16.mxu1 %v1317_v21 }
  0x84   : > { %648 = vmatmul.mubr.bf16.gmra.mrb[4].mxu0 %v1319_v22  ;;  %712 = vmatmul.mubr.bf16.gmra.mrb[4].mxu1 %v1320_v23 }
  0x85   : > { %655 = vmatprep.mubr.bf16.mxu0 %v1321_v24  ;;  %719 = vmatprep.mubr.bf16.mxu1 %v1323_v25 }
  0x8c   : > { %656 = vmatmul.mubr.bf16.gmra.mrb[8].mxu0 %v1325_v26  ;;  %720 = vmatmul.mubr.bf16.gmra.mrb[8].mxu1 %v1326_v27 }
  0x8d   : > { %663 = vmatprep.mubr.bf16.mxu0 %v1327_v28  ;;  %727 = vmatprep.mubr.bf16.mxu1 %v1329_v29 }
  0x94   : > { %664 = vmatmul.mubr.bf16.gmra.mrb[12].mxu0 %v1331_v30  ;;  %728 = vmatmul.mubr.bf16.gmra.mrb[12].mxu1 %v1332_v31 }
  0x95   : > { %671 = vmatprep.mubr.bf16.mxu0 %v1333_v32  ;;  %735 = vmatprep.mubr.bf16.mxu1 %v1335_v33 }
  0x9c   : > { %672 = vmatmul.mubr.bf16.gmra.mrb[16].mxu0 %v1337_v34  ;;  %736 = vmatmul.mubr.bf16.gmra.mrb[16].mxu1 %v1338_v35 }
  0x9d   : > { %679 = vmatprep.mubr.bf16.mxu0 %v1339_v36  ;;  %743 = vmatprep.mubr.bf16.mxu1 %v1341_v37 }
  0xa4   : > { %680 = vmatmul.mubr.bf16.gmra.mrb[20].mxu0 %v1343_v38  ;;  %744 = vmatmul.mubr.bf16.gmra.mrb[20].mxu1 %v1344_v39 }
  0xa5   : > { %687 = vmatprep.mubr.bf16.mxu0 %v1345_v40  ;;  %751 = vmatprep.mubr.bf16.mxu1 %v1347_v41 }
  0xac   : > { %688 = vmatmul.mubr.bf16.gmra.mrb[24].mxu0 %v1349_v42  ;;  %752 = vmatmul.mubr.bf16.gmra.mrb[24].mxu1 %v1350_v43 }
  0xad   : > { %695 = vmatprep.mubr.bf16.mxu0 %v1351_v44  ;;  %759 = vmatprep.mubr.bf16.mxu1 %v1353_v45 }
  0xb4   : > { %696 = vmatmul.mubr.bf16.gmra.mrb[28].mxu0 %v1355_v46  ;;  %760 = vmatmul.mubr.bf16.gmra.mrb[28].mxu1 %v1356_v47 }
 0x14f   : > { %v1102_v48 = vpop.f32.mrb[0].mxu0  ;;  %v1150_v49 = vpop.f32.mrb[0].mxu1 }
 0x150   : > { %v1103_v50 = vpop.f32.mrb[1].mxu0  ;;  %v1151_v51 = vpop.f32.mrb[1].mxu1 }
 0x151   : > { %v1104_v52 = vadd.f32 %v1103_v50, %v1102_v48  ;;  %v1152_v53 = vadd.f32 %v1151_v51, %v1150_v49  ;;  %v1105_v54 = vpop.f32.mrb[2].mxu0  ;;  %v1153_v55 = vpop.f32.mrb[2].mxu1 }
 0x152   : > { %v1106_v56 = vpop.f32.mrb[3].mxu0  ;;  %v1154_v57 = vpop.f32.mrb[3].mxu1 }
 0x153   : > { %867 = vst [vmem:[%s1728_s17] sm:$0xff] %v1104_v52  ;;  %883 = vst [vmem:[%s1728_s17 + $0x80] sm:$0xff] %v1152_v53  ;;  %v1107_v58 = vadd.f32 %v1106_v56, %v1105_v54  ;;  %v1155_v59 = vadd.f32 %v1154_v57, %v1153_v55 }
 0x155   : > { %868 = vst [vmem:[%s1728_s17 + $0x8] sm:$0xff] %v1107_v58  ;;  %884 = vst [vmem:[%s1728_s17 + $0x88] sm:$0xff] %v1155_v59 }
 0x157   : > { %v1108_v60 = vpop.f32.mrb[4].mxu0  ;;  %v1156_v61 = vpop.f32.mrb[4].mxu1 }
 0x158   : > { %v1109_v62 = vpop.f32.mrb[5].mxu0  ;;  %v1157_v63 = vpop.f32.mrb[5].mxu1 }
 0x159   : > { %v1110_v0 = vadd.f32 %v1109_v62, %v1108_v60  ;;  %v1158_v1 = vadd.f32 %v1157_v63, %v1156_v61  ;;  %v1111_v2 = vpop.f32.mrb[6].mxu0  ;;  %v1159_v3 = vpop.f32.mrb[6].mxu1 }
 0x15a   : > { %v1112_v4 = vpop.f32.mrb[7].mxu0  ;;  %v1160_v5 = vpop.f32.mrb[7].mxu1 }
 0x15b   : > { %869 = vst [vmem:[%s1728_s17 + $0x10] sm:$0xff] %v1110_v0  ;;  %885 = vst [vmem:[%s1728_s17 + $0x90] sm:$0xff] %v1158_v1  ;;  %v1113_v6 = vadd.f32 %v1112_v4, %v1111_v2  ;;  %v1161_v7 = vadd.f32 %v1160_v5, %v1159_v3 }
 0x15d   : > { %870 = vst [vmem:[%s1728_s17 + $0x18] sm:$0xff] %v1113_v6  ;;  %886 = vst [vmem:[%s1728_s17 + $0x98] sm:$0xff] %v1161_v7 }
 0x15f   : > { %v1114_v8 = vpop.f32.mrb[8].mxu0  ;;  %v1162_v9 = vpop.f32.mrb[8].mxu1 }
 0x160   : > { %v1115_v10 = vpop.f32.mrb[9].mxu0  ;;  %v1163_v11 = vpop.f32.mrb[9].mxu1 }
 0x161   : > { %v1116_v12 = vadd.f32 %v1115_v10, %v1114_v8  ;;  %v1164_v13 = vadd.f32 %v1163_v11, %v1162_v9  ;;  %v1117_v14 = vpop.f32.mrb[10].mxu0  ;;  %v1165_v15 = vpop.f32.mrb[10].mxu1 }
 0x162   : > { %v1118_v16 = vpop.f32.mrb[11].mxu0  ;;  %v1166_v17 = vpop.f32.mrb[11].mxu1 }
 0x163   : > { %871 = vst [vmem:[%s1728_s17 + $0x20] sm:$0xff] %v1116_v12  ;;  %887 = vst [vmem:[%s1728_s17 + $0xa0] sm:$0xff] %v1164_v13  ;;  %v1119_v18 = vadd.f32 %v1118_v16, %v1117_v14  ;;  %v1167_v19 = vadd.f32 %v1166_v17, %v1165_v15 }
 0x165   : > { %872 = vst [vmem:[%s1728_s17 + $0x28] sm:$0xff] %v1119_v18  ;;  %888 = vst [vmem:[%s1728_s17 + $0xa8] sm:$0xff] %v1167_v19 }
 0x167   : > { %v1120_v20 = vpop.f32.mrb[12].mxu0  ;;  %v1168_v21 = vpop.f32.mrb[12].mxu1 }
 0x168   : > { %v1121_v22 = vpop.f32.mrb[13].mxu0  ;;  %v1169_v23 = vpop.f32.mrb[13].mxu1 }
 0x169   : > { %v1122_v24 = vadd.f32 %v1121_v22, %v1120_v20  ;;  %v1170_v25 = vadd.f32 %v1169_v23, %v1168_v21  ;;  %v1123_v26 = vpop.f32.mrb[14].mxu0  ;;  %v1171_v27 = vpop.f32.mrb[14].mxu1 }
 0x16a   : > { %v1124_v28 = vpop.f32.mrb[15].mxu0  ;;  %v1172_v29 = vpop.f32.mrb[15].mxu1 }
 0x16b   : > { %873 = vst [vmem:[%s1728_s17 + $0x30] sm:$0xff] %v1122_v24  ;;  %889 = vst [vmem:[%s1728_s17 + $0xb0] sm:$0xff] %v1170_v25  ;;  %v1125_v30 = vadd.f32 %v1124_v28, %v1123_v26  ;;  %v1173_v31 = vadd.f32 %v1172_v29, %v1171_v27 }
 0x16d   : > { %874 = vst [vmem:[%s1728_s17 + $0x38] sm:$0xff] %v1125_v30  ;;  %890 = vst [vmem:[%s1728_s17 + $0xb8] sm:$0xff] %v1173_v31 }
 0x16f   : > { %v1126_v32 = vpop.f32.mrb[16].mxu0  ;;  %v1174_v33 = vpop.f32.mrb[16].mxu1 }
 0x170   : > { %v1127_v34 = vpop.f32.mrb[17].mxu0  ;;  %v1175_v35 = vpop.f32.mrb[17].mxu1 }
 0x171   : > { %v1128_v36 = vadd.f32 %v1127_v34, %v1126_v32  ;;  %v1176_v37 = vadd.f32 %v1175_v35, %v1174_v33  ;;  %v1129_v38 = vpop.f32.mrb[18].mxu0  ;;  %v1177_v39 = vpop.f32.mrb[18].mxu1 }
 0x172   : > { %v1130_v40 = vpop.f32.mrb[19].mxu0  ;;  %v1178_v41 = vpop.f32.mrb[19].mxu1 }
 0x173   : > { %875 = vst [vmem:[%s1728_s17 + $0x40] sm:$0xff] %v1128_v36  ;;  %891 = vst [vmem:[%s1728_s17 + $0xc0] sm:$0xff] %v1176_v37  ;;  %v1131_v42 = vadd.f32 %v1130_v40, %v1129_v38  ;;  %v1179_v43 = vadd.f32 %v1178_v41, %v1177_v39 }
 0x175   : > { %876 = vst [vmem:[%s1728_s17 + $0x48] sm:$0xff] %v1131_v42  ;;  %892 = vst [vmem:[%s1728_s17 + $0xc8] sm:$0xff] %v1179_v43 }
 0x177   : > { %v1132_v44 = vpop.f32.mrb[20].mxu0  ;;  %v1180_v45 = vpop.f32.mrb[20].mxu1 }
 0x178   : > { %v1133_v46 = vpop.f32.mrb[21].mxu0  ;;  %v1181_v47 = vpop.f32.mrb[21].mxu1 }
 0x179   : > { %v1134_v48 = vadd.f32 %v1133_v46, %v1132_v44  ;;  %v1182_v49 = vadd.f32 %v1181_v47, %v1180_v45  ;;  %v1135_v50 = vpop.f32.mrb[22].mxu0  ;;  %v1183_v51 = vpop.f32.mrb[22].mxu1 }
 0x17a   : > { %v1136_v52 = vpop.f32.mrb[23].mxu0  ;;  %v1184_v53 = vpop.f32.mrb[23].mxu1 }
 0x17b   : > { %877 = vst [vmem:[%s1728_s17 + $0x50] sm:$0xff] %v1134_v48  ;;  %893 = vst [vmem:[%s1728_s17 + $0xd0] sm:$0xff] %v1182_v49  ;;  %v1137_v54 = vadd.f32 %v1136_v52, %v1135_v50  ;;  %v1185_v55 = vadd.f32 %v1184_v53, %v1183_v51 }
 0x17d   : > { %878 = vst [vmem:[%s1728_s17 + $0x58] sm:$0xff] %v1137_v54  ;;  %894 = vst [vmem:[%s1728_s17 + $0xd8] sm:$0xff] %v1185_v55 }
 0x17f   : > { %v1138_v56 = vpop.f32.mrb[24].mxu0  ;;  %v1186_v57 = vpop.f32.mrb[24].mxu1 }
 0x180   : > { %v1139_v58 = vpop.f32.mrb[25].mxu0  ;;  %v1187_v59 = vpop.f32.mrb[25].mxu1 }
 0x181   : > { %v1140_v60 = vadd.f32 %v1139_v58, %v1138_v56  ;;  %v1188_v61 = vadd.f32 %v1187_v59, %v1186_v57  ;;  %v1141_v62 = vpop.f32.mrb[26].mxu0  ;;  %v1189_v63 = vpop.f32.mrb[26].mxu1 }
 0x182   : > { %v1142_v0 = vpop.f32.mrb[27].mxu0  ;;  %v1190_v1 = vpop.f32.mrb[27].mxu1 }
 0x183   : > { %879 = vst [vmem:[%s1728_s17 + $0x60] sm:$0xff] %v1140_v60  ;;  %895 = vst [vmem:[%s1728_s17 + $0xe0] sm:$0xff] %v1188_v61  ;;  %v1143_v2 = vadd.f32 %v1142_v0, %v1141_v62  ;;  %v1191_v3 = vadd.f32 %v1190_v1, %v1189_v63 }
 0x185   : > { %880 = vst [vmem:[%s1728_s17 + $0x68] sm:$0xff] %v1143_v2  ;;  %896 = vst [vmem:[%s1728_s17 + $0xe8] sm:$0xff] %v1191_v3 }
 0x187   : > { %v1144_v4 = vpop.f32.mrb[28].mxu0  ;;  %v1192_v5 = vpop.f32.mrb[28].mxu1 }
 0x188   : > { %v1145_v6 = vpop.f32.mrb[29].mxu0  ;;  %v1193_v7 = vpop.f32.mrb[29].mxu1 }
 0x189   : > { %v1146_v8 = vadd.f32 %v1145_v6, %v1144_v4  ;;  %v1194_v9 = vadd.f32 %v1193_v7, %v1192_v5  ;;  %v1147_v10 = vpop.f32.mrb[30].mxu0  ;;  %v1195_v11 = vpop.f32.mrb[30].mxu1 }
 0x18a   : > { %v1148_v12 = vpop.f32.mrb[31].mxu0  ;;  %v1196_v13 = vpop.f32.mrb[31].mxu1 }
 0x18b   : > { %881 = vst [vmem:[%s1728_s17 + $0x70] sm:$0xff] %v1146_v8  ;;  %897 = vst [vmem:[%s1728_s17 + $0xf0] sm:$0xff] %v1194_v9  ;;  %v1149_v14 = vadd.f32 %v1148_v12, %v1147_v10  ;;  %v1197_v15 = vadd.f32 %v1196_v13, %v1195_v11 }
 0x18d   : > { %882 = vst [vmem:[%s1728_s17 + $0x78] sm:$0xff] %v1149_v14  ;;  %898 = vst [vmem:[%s1728_s17 + $0xf8] sm:$0xff] %v1197_v15 }
 0x18e   : > { %1428 = shalt.err (!%p1425_p5)
}
 0x18f   : > { %s1429_s30 = scalar_lea.hbm %s1763_s6, 4096  ;;  %s1433_s8 = scalar_lea.hbm %s1819_s2, 32768 }
 0x190   : > { %p1430_p9 = scmp.ne.s32.totalorder %s1763_s6, %s1429_s30  ;;  %p1434_p3 = scmp.lt.u32.totalorder %s1763_s6, %s1819_s2 }
 0x191   : > { %p1435_p7 = scmp.lt.u32.totalorder %s1433_s8, %s1429_s30  ;;  %p1437_p4 = scmp.lt.u32.totalorder %s1429_s30, %s1763_s6 }
 0x192   : > { %p1431_p1 = pnand %p1430_p9, %p1622_p11 }
 0x193   : > { %p1436_p13 = por %p1435_p7, %p1434_p3 }
 0x194   : > { %p1432_p2 = pneg %p1431_p1 }
 0x195   : > { %p1438_p6 = por %p1437_p4, %p1436_p13 }
 0x197   : > { %p1439_p8 = pnand %p1438_p6, %p1432_p2 }
 0x199   : > { %1442 = shalt.err (!%p1439_p8)
}
 0x19a   : > { %s1510_s24 = smov 128   ;;  %s1511_s17 = smov 8  }
 0x19b   : > { %1220 = dma.vmem_to_hbm [thread:$0]  (%p1622_p11), %s1765_s21, 4096, %s1763_s6, %s900_s12, %s1510_s24, %s1510_s24, %s1511_s17  }
 0x19c PF: > { %p1237_p12 = scmp.ge.s32.totalorder %s1501_s14, 2  ;;  %s929_s19 = sand.u32 1, %s1481_s9  }
 0x19d   : > { %p1837_p10 = scmp.ne.s32.totalorder %s1827_s20, 0  ;;  %s930_s4 = scalar_lea.sflag [#allocation5], %s929_s19 }
 0x19f   : > { %p1231_p0 = pnand %p1237_p12, %p1837_p10 }
 0x1a1   : > { %1476 = dma.done.wait (!%p1231_p0), %s930_s4, 4096  }
 0x1a2   : > { %1478 = vsyncadd (!%p1231_p0), %s930_s4, 4294963200  ;;  %s19_s14 = sadd.s32 1, %s1501_s14   ;;  %s1838_s9 = smov %s1485_s10 }
 0x1a3   : > { %p16_p5 = scmp.ge.s32.totalorder %s19_s14, 10   ;;  %s1839_s10 = smov %s1489_s11 }
 0x1a4   : > { %s1840_s11 = smov %s1631_s28  ;;  %s1841_s12 = smov %s1497_s13 }
 0x1a5   : > { %s1842_s13 = smov %s1844_s25  ;;  %18 = sbr.rel (!%p16_p5) target bundleno = 7 (0x7), region = 86 }
 0x1ac   :  { %935 = vsyncpa [#allocation4], 1 }
 0x1ad   :  { %937 = vsyncpa [#allocation4 + $0x1], 1 }
 0x1ae   :  { %938 = vsyncpa [#allocation7], 1 }
 0x1af   :  { %939 = vsyncpa [#allocation5], 1 }
 0x1b0   :  { %941 = vsyncpa [#allocation5 + $0x1], 1 }

</bundles_post_ra>
